<compile_context>
chip_gen: v6e
topology: v6e:2x2x1
jax: 0.10.0
libtpu: 0.0.40
codegen_flags: <defaults>
</compile_context>

<pallas_src>
import functools
import math

import jax
import jax.numpy as jnp
from jax.experimental import pallas as pl
from jax.experimental.pallas import tpu as pltpu


# ------------------------------ layout planning -----------------------------

_LANE_CANDIDATES = (512, 256, 128)   # lane-dense last dims (multiples of 128)
_DEFAULT_LANE = 512
_SMALL_BYTES = 256 * 1024            # below this: plain jnp fallback
_VMEM_WORKSET_BYTES = 32 * 1024 * 1024   # (K+1) arrays x 2 buffers x tile
_VMEM_LIMIT_BYTES = 48 * 1024 * 1024     # scoped VMEM limit (< v7x 64 MiB phys)
_MAX_TILE_ROWS = 2048


def _round_up(x, m):
    return ((x + m - 1) // m) * m


def _sublane_multiple(dtype):
    # 8 for 4-byte, 16 for 2-byte, 32 for 1-byte dtypes (packed sublane tile).
    return max(8, 32 // jnp.dtype(dtype).itemsize)


def _plan_layout(total, dtype, K):
    """Return (lane, rows, tile_r, padded_total) for a flat tensor of `total` elems."""
    # Largest lane width that divides `total` -> zero-copy reshape; else pad
    # only up to the next multiple of the default lane width.
    lane = next((c for c in _LANE_CANDIDATES if total % c == 0), _DEFAULT_LANE)
    padded_total = _round_up(total, lane)
    rows = padded_total // lane

    sub = _sublane_multiple(dtype)
    itemsize = jnp.dtype(dtype).itemsize
    # Tile rows from the double-buffered VMEM working-set budget.
    tile_r = _VMEM_WORKSET_BYTES // (2 * (K + 1) * lane * itemsize)
    tile_r = max(sub, min(_MAX_TILE_ROWS, (tile_r // sub) * sub))
    # Keep >= 2 grid steps so "parallel" can shard across v7x's two TensorCores.
    if (rows + tile_r - 1) // tile_r < 2 and rows > sub:
        tile_r = max(sub, _round_up((rows + 1) // 2, sub))
    return lane, rows, tile_r, padded_total


# ------------------------------ Pallas kernel -------------------------------

def _make_scale_acc_kernel(K):
    """Kernel: o = sum_k scale[k] * g_k over one (tile_r, lane) tile."""

    def kernel(*refs):
        g_refs = refs[:K]
        scale_ref = refs[K]      # SMEM (K,) f32
        o_ref = refs[K + 1]
        acc = scale_ref[0] * g_refs[0][...].astype(jnp.float32)
        for k in range(1, K):
            acc = acc + scale_ref[k] * g_refs[k][...].astype(jnp.float32)
        o_ref[...] = acc.astype(o_ref.dtype)

    return kernel


def _scale_accumulate(cts_2d, scales_arr, tile_r):
    """cts_2d: K arrays of shape (rows, lane) -> (rows, lane) weighted sum."""
    K = len(cts_2d)
    rows, lane = cts_2d[0].shape
    grid = ((rows + tile_r - 1) // tile_r,)
    return pl.pallas_call(
        _make_scale_acc_kernel(K),
        out_shape=jax.ShapeDtypeStruct((rows, lane), cts_2d[0].dtype),
        grid=grid,
        in_specs=[pl.BlockSpec((tile_r, lane), lambda i: (i, 0))
                  for _ in range(K)]
                 + [pl.BlockSpec(memory_space=pltpu.MemorySpace.SMEM)],
        out_specs=pl.BlockSpec((tile_r, lane), lambda i: (i, 0)),
        input_output_aliases={0: 0},   # reuse ct_0's HBM buffer for the output
        compiler_params=pltpu.CompilerParams(
            dimension_semantics=("parallel",),
            vmem_limit_bytes=_VMEM_LIMIT_BYTES),
    )(*cts_2d, scales_arr)


# ------------------------- custom_vjp = ScaleGrad ---------------------------

@functools.partial(jax.custom_vjp, nondiff_argnums=(0,))
def _scaled_split(grad_weights, inputs):
    # Forward: pure identity split — no copies, same (un)nesting as PyTorch.
    nested = tuple(tuple(inp for inp in inputs) for _ in grad_weights)
    unnest_inputs = tuple(s[0] if len(s) == 1 else s for s in nested)
    return unnest_inputs[0] if len(unnest_inputs) == 1 else unnest_inputs


def _scaled_split_fwd(grad_weights, inputs):
    return _scaled_split(grad_weights, inputs), None


def _scaled_split_bwd(grad_weights, _res, ct):
    K = len(grad_weights)
    scales = tuple(float(w) for w in grad_weights)
    scales_arr = jnp.asarray(scales, dtype=jnp.float32)

    # Re-nest cotangents into (K splits) x (n_inputs) structure.
    splits_ct = (ct,) if K == 1 else tuple(ct)
    norm = [tuple(s) if isinstance(s, (tuple, list)) else (s,) for s in splits_ct]
    n_inputs = len(norm[0])

    grads_in = []
    for j in range(n_inputs):
        cts = [norm[i][j] for i in range(K)]
        shape = cts[0].shape
        dtype = cts[0].dtype
        total = math.prod(shape) if shape else 1
        nbytes = total * jnp.dtype(dtype).itemsize

        if nbytes < _SMALL_BYTES:
            # Small-tensor fallback: XLA fuses this into one elementwise pass.
            g = scales[0] * cts[0].astype(jnp.float32)
            for k in range(1, K):
                g = g + scales[k] * cts[k].astype(jnp.float32)
            grads_in.append(g.astype(dtype).reshape(shape))
            continue

        lane, rows, tile_r, padded_total = _plan_layout(total, dtype, K)

        cts_2d = []
        for c in cts:
            flat = c.reshape(-1)
            if padded_total != total:
                # Rare path: element count not divisible by 128.
                flat = jnp.pad(flat, (0, padded_total - total))
            cts_2d.append(flat.reshape(rows, lane))

        acc = _scale_accumulate(cts_2d, scales_arr, tile_r)
        if padded_total != total:
            acc = acc.reshape(-1)[:total]
        grads_in.append(acc.reshape(shape))

    # Cotangent for the `inputs` tuple (grad_weights is non-differentiable).
    return (tuple(grads_in),)


_scaled_split.defvjp(_scaled_split_fwd, _scaled_split_bwd)


# ------------------------------ module wrapper ------------------------------

class ScaledSplit:
    """Identity-maps inputs into len(grad_weights) outputs; scales grads in bwd."""

    def __init__(self, *grad_weights):
        self.set_scales(*grad_weights)

    def set_scales(self, *grad_weights):
        self.grad_weights = tuple(float(w) for w in grad_weights)

    def get_scales(self):
        return self.grad_weights

    def __call__(self, *inputs):
        return _scaled_split(self.grad_weights, tuple(inputs))


# ---------------------------------- main ------------------------------------

if __name__ == "__main__":
    key = jax.random.PRNGKey(0)
    k1, k2, k3 = jax.random.split(key, 3)
    # Small conv-style / sequence tensors (exercise the fused-jnp fallback) and
    # a 1 MiB activation-sized tensor (exercises the Pallas scale-accumulate).
    x1 = jax.random.normal(k1, (2, 4, 16, 16), dtype=jnp.float32)
    x2 = jax.random.normal(k2, (2, 8, 32), dtype=jnp.float32)
    x3 = jax.random.normal(k3, (2, 8, 128, 128), dtype=jnp.float32)

    scp = ScaledSplit(0.3, 0.7)

    # Forward: two splits, each a tuple of the three inputs, identical to inputs.
    out = jax.block_until_ready(scp(x1, x2, x3))
    (o1a, o1b, o1c), (o2a, o2b, o2c) = out
    assert jnp.allclose(o1a, x1) and jnp.allclose(o2a, x1)
    assert jnp.allclose(o1b, x2) and jnp.allclose(o2b, x2)
    assert jnp.allclose(o1c, x3) and jnp.allclose(o2c, x3)

    # Backward: gradients of each branch scaled by its weight and summed.
    # (x3's path runs the Pallas scale-accumulate kernel.)
    def loss(a, b, c):
        (y1a, y1b, y1c), (y2a, y2b, y2c) = scp(a, b, c)
        return (jnp.sum(y1a) + 2.0 * jnp.sum(y2a)
                + jnp.sum(y1b) + 3.0 * jnp.sum(y2b)
                + jnp.sum(y1c) + 4.0 * jnp.sum(y2c))

    ga, gb, gc = jax.grad(loss, argnums=(0, 1, 2))(x1, x2, x3)
    jax.block_until_ready((ga, gb, gc))
    assert jnp.allclose(ga, jnp.full_like(x1, 0.3 * 1.0 + 0.7 * 2.0), atol=1e-5)
    assert jnp.allclose(gb, jnp.full_like(x2, 0.3 * 1.0 + 0.7 * 3.0), atol=1e-5)
    assert jnp.allclose(gc, jnp.full_like(x3, 0.3 * 1.0 + 0.7 * 4.0), atol=1e-5)

    print("KERNEL_OK")
</pallas_src>

<mosaic_0001>
module attributes {stable_mosaic.version = 11 : i64} {
  func.func @kernel(%arg0: i32, %arg1: memref<256x512xf32, #tpu.memory_space<vmem>>, %arg2: memref<256x512xf32, #tpu.memory_space<vmem>>, %arg3: memref<2xf32, #tpu.memory_space<smem>>, %arg4: memref<256x512xf32, #tpu.memory_space<vmem>>) attributes {dimension_semantics = [#tpu.dimension_semantics<parallel>], iteration_bounds = array<i64: 2>, scalar_prefetch = 0 : i64, scratch_operands = 0 : i64, tpu.core_type = #tpu.core_type<tc>, window_params = [{transform_indices = @transform_0, window_bounds = array<i64: 256, 512>}, {transform_indices = @transform_1, window_bounds = array<i64: 256, 512>}, {transform_indices = @transform_2, window_bounds = array<i64: 2>}, {transform_indices = @transform_3, window_bounds = array<i64: 256, 512>}]} {
    %c0 = arith.constant 0 : index
    %0 = memref.load %arg3[%c0] : memref<2xf32, #tpu.memory_space<smem>>
    %c0_0 = arith.constant 0 : index
    %c0_1 = arith.constant 0 : index
    %1 = vector.load %arg1[%c0_0, %c0_1] : memref<256x512xf32, #tpu.memory_space<vmem>>, vector<256x512xf32>
    %2 = vector.broadcast %0 : f32 to vector<256x512xf32>
    %3 = arith.mulf %2, %1 : vector<256x512xf32>
    %c1 = arith.constant 1 : index
    %4 = memref.load %arg3[%c1] : memref<2xf32, #tpu.memory_space<smem>>
    %c0_2 = arith.constant 0 : index
    %c0_3 = arith.constant 0 : index
    %5 = vector.load %arg2[%c0_2, %c0_3] : memref<256x512xf32, #tpu.memory_space<vmem>>, vector<256x512xf32>
    %6 = vector.broadcast %4 : f32 to vector<256x512xf32>
    %7 = arith.mulf %6, %5 : vector<256x512xf32>
    %8 = arith.addf %3, %7 : vector<256x512xf32>
    %c0_4 = arith.constant 0 : index
    %c0_5 = arith.constant 0 : index
    %9 = vector.load %arg4[%c0_4, %c0_5] : memref<256x512xf32, #tpu.memory_space<vmem>>, vector<256x512xf32>
    tpu.vector_store %arg4[%c0_4, %c0_5], %8 {strides = array<i32>} : memref<256x512xf32, #tpu.memory_space<vmem>>, vector<256x512xf32>,
    return
  }
  func.func @transform_0(%arg0: i32) -> (i32, i32) {
    %c0_i32 = arith.constant 0 : i32
    %c0_i32_0 = arith.constant 0 : i32
    return %arg0, %c0_i32 : i32, i32
  }
  func.func @transform_1(%arg0: i32) -> (i32, i32) {
    %c0_i32 = arith.constant 0 : i32
    %c0_i32_0 = arith.constant 0 : i32
    return %arg0, %c0_i32 : i32, i32
  }
  func.func @transform_2(%arg0: i32) -> i32 {
    %c0_i32 = arith.constant 0 : i32
    %c0_i32_0 = arith.constant 0 : i32
    return %c0_i32 : i32
  }
  func.func @transform_3(%arg0: i32) -> (i32, i32) {
    %c0_i32 = arith.constant 0 : i32
    %c0_i32_0 = arith.constant 0 : i32
    return %arg0, %c0_i32 : i32, i32
  }
}

</mosaic_0001>

<bundles_post_ra>
// kernel: tpu_custom_call.1
= control target key start
LH: loop header
LB: loop body
LE: loop exit
PB: predicated region body
PF: predicated region fallthrough
CT: control target
= control target key end

     0   :  { %8 = vsyncpa [#allocation3], 0  ;;  %s2183_s0 = inlined_call_operand.hbm [shape: f32[512,512], index: 0, kind: input, shape index: {}, may-alias: {0,3}]   ;;  %s2184_s1 = inlined_call_operand.vmem [shape: f32[512,512], index: 1, kind: input, shape index: {}]   ;;  %s2185_s2 = inlined_call_operand.vmem [shape: f32[2], index: 2, kind: input, shape index: {}]   ;;  %s2186_s3 = inlined_call_operand.hbm [shape: f32[512,512], index: 3, kind: output, shape index: {}, may-alias: {0,3}]  }
   0x1   :  { %10 = vsyncpa [#allocation3 + $0x1], 0 }
   0x2   :  { %11 = vsyncpa [#allocation5], 0 }
   0x3   :  { %12 = vsyncpa [#allocation4], 0 }
   0x4   :  { %14 = vsyncpa [#allocation4 + $0x1], 0  ;;  %s1343_s12 = smov 0   ;;  %s1345_s13 = smov 0  }
   0x5   :  { %s1347_s14 = smov 0   ;;  %s1349_s15 = smov 0  }
   0x6 LB: > { %s1364_s16 = sadd.s32 4294967295, %s1314_s15   ;;  %s1115_s17 = sadd.s32 4294967294, %s1314_s15   ;;  %s1314_s15 = sphi %s1349_s15, %s2208_s15   ;;  %s1310_s14 = sphi %s1347_s14, %s2207_s14   ;;  %s1306_s13 = sphi %s1345_s13, %s2206_s13   ;;  %s1302_s12 = sphi %s1343_s12, %s2205_s12  }
   0x7   : > { %s1368_s18 = sadd.s32 1, %s1314_s15   ;;  %s27_s19 = sadd.s32 1, %s1310_s14 }
   0x8   : > { %s24_s20 = ssub.s32 %s1314_s15, %s1368_s18  ;;  %p34_p0 = scmp.ne.s32.totalorder %s1310_s14, %s1306_s13 }
   0x9   : > { %p25_p1 = scmp.eq.s32.totalorder %s24_s20, 0  ;;  %p35_p2 = scmp.eq.s32.totalorder %s1314_s15, 0 }
   0xa   : > { %p40_p3 = scmp.ne.s32.totalorder %s1306_s13, %s1302_s12  ;;  %p2188_p4 = scmp.eq.s32.totalorder %s1364_s16, 0 }
   0xb   : > { %s1380_s21 = scalar_select %p25_p1, %s1310_s14, %s27_s19  }
   0xc   : > { %p1382_p5 = por %p35_p2, %p34_p0  ;;  %p1388_p6 = por %p2188_p4, %p40_p3 }
   0xd   : > { %p111_p7 = scmp.eq.s32.totalorder %s1364_s16, 1  ;;  %p117_p8 = scmp.eq.s32.totalorder %s1115_s17, 1 }
   0xe   : > { %s2192_s23 = scalar_select %p1388_p6, 1, 0 }
   0xf   : > { %p1116_p9 = scmp.ge.s32.totalorder %s1314_s15, 1  ;;  %p124_p10 = scmp.lt.s32.totalorder %s1314_s15, 3 }
  0x10   : > { %p1395_p11 = por %p111_p7, %p34_p0  ;;  %p1399_p12 = por %p117_p8, %p40_p3 }
  0x11   : > { %p1403_p13 = pnand %p1116_p9, %p124_p10  ;;  %s137_s29 = sshll.u32 %s2185_s2, 4  ;;  %s138_s29 = int_to_ptr.vmem [resolvable:$true] %s137_s29 }
  0x12   : > { %s2193_s24 = scalar_select %p1395_p11, 1, 0 }
  0x13   : > { %s2194_s25 = scalar_select %p1399_p12, 1, 0 }
  0x14   : > { %s2195_s26 = scalar_select %p1403_p13, 1, 0 }
  0x15   : > { %p1150_p1 = pneg %p1403_p13  ;;  %p1163_p2 = scmp.lt.s32.totalorder %s1314_s15, 2 }
  0x16   : > { %s148_s4 = sand.u32 1, %s1310_s14   ;;  %s1203_s7 = scalar_lea.vmem %s138_s29, 16 }
  0x17   : > { %p1416_p7 = pnand %p1150_p1, %p2188_p4  ;;  %p1423_p3 = pnand %p1163_p2, %p1382_p5 }
  0x18   : > { %s1119_s6 = sshll.u32 %s148_s4, 10  ;;  %p1204_p8 = scmp.ne.s32.totalorder %s138_s29, %s1203_s7 }
  0x19   : > { %p1205_p9 = pneg %p1416_p7  ;;  %p1211_p12 = scmp.lt.s32.totalorder %s138_s29, %s138_s29 }
  0x1a   : > { %p1212_p11 = scmp.lt.s32.totalorder %s1203_s7, %s1203_s7 }
  0x1b   : > { %p1206_p10 = pnand %p1205_p9, %p1204_p8 }
  0x1c   : > { %p1213_p1 = por %p1212_p11, %p1211_p12 }
  0x1d   : > { %p1207_p0 = pneg %p1206_p10 }
  0x1f   : > { %p1214_p4 = pnand %p1213_p1, %p1207_p0 }
  0x21   : > { %1217 = shalt.err (!%p1214_p4)
}
  0x22   : > { %s1316_s8 = smov [#allocation6]   ;;  %s1138_s9 = sshll.u32 %s1314_s15, 14 }
  0x23   : > { %1153 = dma.vmem_to_smem (!%p1416_p7), %s138_s29, 16, %s1316_s8, [#allocation5]  }
  0x24   : > { %s152_s10 = scalar_lea.vmem [#allocation2], %s1119_s6  ;;  %s1435_s20 = scalar_lea.hbm %s2183_s0, %s1138_s9 }
  0x25   : > { %s160_s11 = sshll.u32 %s152_s10, 4  ;;  %s1439_s22 = scalar_lea.sflag [#allocation3], %s148_s4  ;;  %s1437_s11 = int_to_ptr.vmem [resolvable:$true] %s160_s11 }
  0x26   : > { %s1218_s27 = scalar_lea.hbm %s1435_s20, 16384  ;;  %p1220_p5 = pneg %p1423_p3 }
  0x27   : > { %p1219_p4 = scmp.ne.s32.totalorder %s1435_s20, %s1218_s27  ;;  %s1223_s30 = scalar_lea.hbm %s2183_s0, 32768 }
  0x28   : > { %p1224_p0 = scmp.lt.s32.totalorder %s1435_s20, %s2183_s0  ;;  %p1225_p2 = scmp.lt.s32.totalorder %s1223_s30, %s1218_s27 }
  0x29   : > { %p1221_p11 = pnand %p1220_p5, %p1219_p4 }
  0x2a   : > { %p1226_p7 = por %p1225_p2, %p1224_p0 }
  0x2b   : > { %p1222_p12 = pneg %p1221_p11 }
  0x2d   : > { %p1227_p8 = pnand %p1226_p7, %p1222_p12 }
  0x2f   : > { %1230 = shalt.err (!%p1227_p8)
}
  0x30   : > { %s1231_s4 = scalar_lea.vmem %s1437_s11, 16384  ;;  %s1317_s8 = smov [#allocation2]  }
  0x31   : > { %p1232_p9 = scmp.ne.s32.totalorder %s1437_s11, %s1231_s4  ;;  %s1236_s9 = sshll.u32 %s1317_s8, 4  ;;  %s1237_s9 = int_to_ptr.vmem [resolvable:$false] %s1236_s9 }
  0x32   : > { %s1238_s10 = scalar_lea.vmem %s1237_s9, 32768  ;;  %p1239_p4 = scmp.lt.s32.totalorder %s1437_s11, %s1237_s9 }
  0x33   : > { %p1234_p10 = pnand %p1232_p9, %p1220_p5  ;;  %p1240_p11 = scmp.lt.s32.totalorder %s1238_s10, %s1231_s4 }
  0x35   : > { %p1235_p1 = pneg %p1234_p10  ;;  %p1241_p6 = por %p1240_p11, %p1239_p4 }
  0x37   : > { %p1242_p13 = pnand %p1241_p6, %p1235_p1 }
  0x39   : > { %1245 = shalt.err (!%p1242_p13)
}
  0x3a   : > { %s1318_s17 = smov 512   ;;  %s1319_s19 = smov 32  }
  0x3b   : > { %1157 = dma.hbm_to_vmem [thread:$0]  (!%p1423_p3), %s1435_s20, 16384, %s1437_s11, %s1439_s22, %s1318_s17, %s1318_s17, %s1319_s19  }
  0x3c   : > { %p2198_p5 = scmp.ne.s32.totalorder %s2195_s26, 0 }
  0x3d   : > { %s1463_s27 = sand.u32 (!%p2198_p5), 1, %s1306_s13   ;;  %p2199_p6 = scmp.ne.s32.totalorder (!%p2198_p5), %s2192_s23, 0 }
  0x3e   : > { %182 = sbr.rel (%p2198_p5) target bundleno = 200 (0xc8), region = 32  ;;  %s1124_s28 = sshll.u32 (!%p2198_p5), %s1463_s27, 10 }
  0x3f   : > { %s185_s29 = scalar_lea.sflag (!%p2198_p5), [#allocation3], %s1463_s27  ;;  %s1469_s30 = scalar_lea.vmem (!%p2198_p5), [#allocation2], %s1124_s28 }
  0x43   : > { %1289 = dma.done.wait (%p2199_p6), %s185_s29, 16384  }
  0x44   : > { %1291 = vsyncadd (%p2199_p6), %s185_s29, 4294950912  ;;  %p2200_p13 = scmp.eq.s32.totalorder %s1364_s16, 0 }
  0x46   : > { %1293 = dma.done.wait (%p2200_p13), [#allocation5], 16   ;;  %p2201_p3 = pmov %p2200_p13 }
  0x48   : > { %1295 = vsyncadd (%p2201_p3), [#allocation5], 4294967280 }
  0x49   : > { %197 = sfence }
  0x4a   : > { %s1127_s26 = sshll.u32 %s1364_s16, 5  ;;  %s231_s5 = sld [smem:[#allocation6]]  ;;  %v232_v0 = vld [vmem:[%s1469_s30] sm:$0xff]  ;;  %v233_v1 = vld [vmem:[%s1469_s30 + $0x8] sm:$0xff]  ;;  %v234_v2 = vld [vmem:[%s1469_s30 + $0x10] sm:$0xff] }
  0x4b   : > { %p224_p12 = scmp.lt.s32.totalorder %s1127_s26, 63  ;;  %s1130_s11 = sld [smem:[#allocation6 + $0x1]]  ;;  %v235_v3 = vld [vmem:[%s1469_s30 + $0x18] sm:$0xff]  ;;  %v236_v4 = vld [vmem:[%s1469_s30 + $0x20] sm:$0xff]  ;;  %v237_v5 = vld [vmem:[%s1469_s30 + $0x28] sm:$0xff] }
  0x4c   : > { %v238_v21 = vld [vmem:[%s1469_s30 + $0x30] sm:$0xff]  ;;  %v239_v27 = vld [vmem:[%s1469_s30 + $0x38] sm:$0xff]  ;;  %v240_v29 = vld [vmem:[%s1469_s30 + $0x40] sm:$0xff]  ;;  %s1528_s7 = scalar_lea.vmem [#allocation7], %s1124_s28  ;;  %s1141_s4 = sshll.u32 %s1364_s16, 14 }
  0x4d   : > { %s2210_s26 = smov (!%p224_p12, %s1127_s26), 63  ;;  %v241_v35 = vld [vmem:[%s1469_s30 + $0x48] sm:$0xff]  ;;  %v242_v41 = vld [vmem:[%s1469_s30 + $0x50] sm:$0xff]  ;;  %v243_v43 = vld [vmem:[%s1469_s30 + $0x58] sm:$0xff]  ;;  %s1018_s8 = sshll.u32 %s1528_s7, 4  ;;  %s2136_s8 = int_to_ptr.vmem [resolvable:$true] %s1018_s8 }
  0x4e   : > { %s1139_s23 = sshll.u32 %s2210_s26, 5  ;;  %v244_v49 = vld [vmem:[%s1469_s30 + $0x60] sm:$0xff]  ;;  %v245_v55 = vld [vmem:[%s1469_s30 + $0x68] sm:$0xff]  ;;  %v246_v61 = vld [vmem:[%s1469_s30 + $0x70] sm:$0xff]  ;;  %s2134_s10 = scalar_lea.hbm %s2186_s3, %s1141_s4 }
  0x4f   : > { %s1486_s6 = scalar_lea.vmem %s2184_s1, %s1139_s23  ;;  %v247_v63 = vld [vmem:[%s1469_s30 + $0x78] sm:$0xff]  ;;  %s1004_s17 = scalar_lea.sflag [#allocation4], %s1463_s27 }
  0x50   : > { %v1491_v6 = vstv %s231_s5  ;;  %v490_v7 = vld [vmem:[%s1486_s6] sm:$0xff]  ;;  %v491_v8 = vld [vmem:[%s1486_s6 + $0x8] sm:$0xff]  ;;  %v492_v9 = vld [vmem:[%s1486_s6 + $0x10] sm:$0xff]  ;;  %s1246_s19 = scalar_lea.vmem %s2136_s8, 16384  ;;  %p2202_p2 = scmp.ne.s32.totalorder %s2193_s24, 0 }
  0x51   : > { %v361_v10 = vmul.f32 %v1491_v6, %v232_v0  ;;  %v1497_v11 = vstv %s1130_s11  ;;  %v362_v12 = vmul.f32 %v1491_v6, %v233_v1  ;;  %v363_v13 = vmul.f32 %v1491_v6, %v234_v2  ;;  %v493_v14 = vld [vmem:[%s1486_s6 + $0x18] sm:$0xff]  ;;  %v494_v15 = vld [vmem:[%s1486_s6 + $0x20] sm:$0xff]  ;;  %v495_v16 = vld [vmem:[%s1486_s6 + $0x28] sm:$0xff]  ;;  %p1247_p0 = scmp.ne.s32.totalorder %s2136_s8, %s1246_s19  ;;  %s1320_s28 = smov [#allocation7]  }
  0x52   : > { %v619_v17 = vmul.f32 %v1497_v11, %v490_v7  ;;  %v620_v18 = vmul.f32 %v1497_v11, %v491_v8  ;;  %v621_v19 = vmul.f32 %v1497_v11, %v492_v9  ;;  %v364_v20 = vmul.f32 %v1491_v6, %v235_v3  ;;  %v496_v22 = vld [vmem:[%s1486_s6 + $0x30] sm:$0xff]  ;;  %v497_v28 = vld [vmem:[%s1486_s6 + $0x38] sm:$0xff]  ;;  %v498_v34 = vld [vmem:[%s1486_s6 + $0x40] sm:$0xff]  ;;  %s1250_s29 = sshll.u32 %s1320_s28, 4  ;;  %s1251_s29 = int_to_ptr.vmem [resolvable:$false] %s1250_s29 }
  0x53   : > { %v622_v23 = vmul.f32 %v1497_v11, %v493_v14  ;;  %v365_v24 = vmul.f32 %v1491_v6, %v236_v4  ;;  %v623_v25 = vmul.f32 %v1497_v11, %v494_v15  ;;  %v366_v26 = vmul.f32 %v1491_v6, %v237_v5  ;;  %v499_v36 = vld [vmem:[%s1486_s6 + $0x48] sm:$0xff]  ;;  %v500_v42 = vld [vmem:[%s1486_s6 + $0x50] sm:$0xff]  ;;  %v501_v48 = vld [vmem:[%s1486_s6 + $0x58] sm:$0xff]  ;;  %p1248_p7 = pnand %p1247_p0, %p2202_p2  ;;  %p1253_p9 = scmp.lt.s32.totalorder %s2136_s8, %s1251_s29 }
  0x54   : > { %v747_v30 = vadd.f32 %v619_v17, %v361_v10  ;;  %v748_v31 = vadd.f32 %v620_v18, %v362_v12  ;;  %v749_v32 = vadd.f32 %v621_v19, %v363_v13  ;;  %v624_v33 = vmul.f32 %v1497_v11, %v495_v16  ;;  %v502_v54 = vld [vmem:[%s1486_s6 + $0x60] sm:$0xff]  ;;  %v503_v56 = vld [vmem:[%s1486_s6 + $0x68] sm:$0xff]  ;;  %v504_v62 = vld [vmem:[%s1486_s6 + $0x70] sm:$0xff] }
  0x55   : > { %v750_v37 = vadd.f32 %v622_v23, %v364_v20  ;;  %v751_v38 = vadd.f32 %v623_v25, %v365_v24  ;;  %v367_v39 = vmul.f32 %v1491_v6, %v238_v21  ;;  %v625_v40 = vmul.f32 %v1497_v11, %v496_v22  ;;  %v505_v4 = vld [vmem:[%s1486_s6 + $0x78] sm:$0xff]  ;;  %v248_v5 = vld [vmem:[%s1469_s30 + $0x80] sm:$0xff]  ;;  %v249_v13 = vld [vmem:[%s1469_s30 + $0x88] sm:$0xff]  ;;  %p1249_p8 = pneg %p1248_p7 }
  0x56   : > { %875 = vst [vmem:[%s1528_s7] sm:$0xff] %v747_v30  ;;  %876 = vst [vmem:[%s1528_s7 + $0x8] sm:$0xff] %v748_v31  ;;  %v752_v44 = vadd.f32 %v624_v33, %v366_v26  ;;  %v368_v45 = vmul.f32 %v1491_v6, %v239_v27  ;;  %v626_v46 = vmul.f32 %v1497_v11, %v497_v28  ;;  %v506_v12 = vld [vmem:[%s1486_s6 + $0x80] sm:$0xff]  ;;  %v507_v14 = vld [vmem:[%s1486_s6 + $0x88] sm:$0xff] }
  0x57   : > { %877 = vst [vmem:[%s1528_s7 + $0x10] sm:$0xff] %v749_v32  ;;  %v369_v47 = vmul.f32 %v1491_v6, %v240_v29  ;;  %878 = vst [vmem:[%s1528_s7 + $0x18] sm:$0xff] %v750_v37  ;;  %v753_v50 = vadd.f32 %v625_v40, %v367_v39  ;;  %v627_v51 = vmul.f32 %v1497_v11, %v498_v34  ;;  %v250_v19 = vld [vmem:[%s1469_s30 + $0x90] sm:$0xff]  ;;  %v251_v21 = vld [vmem:[%s1469_s30 + $0x98] sm:$0xff] }
  0x58   : > { %879 = vst [vmem:[%s1528_s7 + $0x20] sm:$0xff] %v751_v38  ;;  %v370_v52 = vmul.f32 %v1491_v6, %v241_v35  ;;  %v628_v53 = vmul.f32 %v1497_v11, %v499_v36  ;;  %880 = vst [vmem:[%s1528_s7 + $0x28] sm:$0xff] %v752_v44  ;;  %v754_v57 = vadd.f32 %v626_v46, %v368_v45  ;;  %v508_v20 = vld [vmem:[%s1486_s6 + $0x90] sm:$0xff]  ;;  %v509_v26 = vld [vmem:[%s1486_s6 + $0x98] sm:$0xff] }
  0x59   : > { %v371_v58 = vmul.f32 %v1491_v6, %v242_v41  ;;  %v629_v59 = vmul.f32 %v1497_v11, %v500_v42  ;;  %v372_v60 = vmul.f32 %v1491_v6, %v243_v43  ;;  %881 = vst [vmem:[%s1528_s7 + $0x30] sm:$0xff] %v753_v50  ;;  %v755_v0 = vadd.f32 %v627_v51, %v369_v47  ;;  %v252_v27 = vld [vmem:[%s1469_s30 + $0xa0] sm:$0xff]  ;;  %v253_v33 = vld [vmem:[%s1469_s30 + $0xa8] sm:$0xff]  ;;  %v254_v39 = vld [vmem:[%s1469_s30 + $0xb0] sm:$0xff] }
  0x5a   : > { %v756_v1 = vadd.f32 %v628_v53, %v370_v52  ;;  %v630_v2 = vmul.f32 %v1497_v11, %v501_v48  ;;  %v373_v3 = vmul.f32 %v1491_v6, %v244_v49  ;;  %882 = vst [vmem:[%s1528_s7 + $0x38] sm:$0xff] %v754_v57  ;;  %v631_v8 = vmul.f32 %v1497_v11, %v502_v54  ;;  %v510_v32 = vld [vmem:[%s1486_s6 + $0xa0] sm:$0xff]  ;;  %v511_v34 = vld [vmem:[%s1486_s6 + $0xa8] sm:$0xff]  ;;  %v512_v40 = vld [vmem:[%s1486_s6 + $0xb0] sm:$0xff] }
  0x5b   : > { %v757_v7 = vadd.f32 %v629_v59, %v371_v58  ;;  %v374_v9 = vmul.f32 %v1491_v6, %v245_v55  ;;  %v632_v10 = vmul.f32 %v1497_v11, %v503_v56  ;;  %883 = vst [vmem:[%s1528_s7 + $0x40] sm:$0xff] %v755_v0  ;;  %v375_v16 = vmul.f32 %v1491_v6, %v246_v61  ;;  %v255_v41 = vld [vmem:[%s1469_s30 + $0xb8] sm:$0xff]  ;;  %v256_v47 = vld [vmem:[%s1469_s30 + $0xc0] sm:$0xff]  ;;  %v257_v53 = vld [vmem:[%s1469_s30 + $0xc8] sm:$0xff] }
  0x5c   : > { %884 = vst [vmem:[%s1528_s7 + $0x48] sm:$0xff] %v756_v1  ;;  %v758_v15 = vadd.f32 %v630_v2, %v372_v60  ;;  %v633_v17 = vmul.f32 %v1497_v11, %v504_v62  ;;  %v376_v18 = vmul.f32 %v1491_v6, %v247_v63  ;;  %v759_v22 = vadd.f32 %v631_v8, %v373_v3  ;;  %v513_v46 = vld [vmem:[%s1486_s6 + $0xb8] sm:$0xff]  ;;  %v514_v52 = vld [vmem:[%s1486_s6 + $0xc0] sm:$0xff]  ;;  %v515_v54 = vld [vmem:[%s1486_s6 + $0xc8] sm:$0xff] }
  0x5d   : > { %885 = vst [vmem:[%s1528_s7 + $0x50] sm:$0xff] %v757_v7  ;;  %v760_v23 = vadd.f32 %v632_v10, %v374_v9  ;;  %v634_v24 = vmul.f32 %v1497_v11, %v505_v4  ;;  %v377_v25 = vmul.f32 %v1491_v6, %v248_v5  ;;  %v635_v29 = vmul.f32 %v1497_v11, %v506_v12  ;;  %v258_v59 = vld [vmem:[%s1469_s30 + $0xd0] sm:$0xff]  ;;  %v259_v61 = vld [vmem:[%s1469_s30 + $0xd8] sm:$0xff]  ;;  %v260_v3 = vld [vmem:[%s1469_s30 + $0xe0] sm:$0xff] }
  0x5e   : > { %886 = vst [vmem:[%s1528_s7 + $0x58] sm:$0xff] %v758_v15  ;;  %v761_v28 = vadd.f32 %v633_v17, %v375_v16  ;;  %v378_v30 = vmul.f32 %v1491_v6, %v249_v13  ;;  %v636_v31 = vmul.f32 %v1497_v11, %v507_v14  ;;  %887 = vst [vmem:[%s1528_s7 + $0x60] sm:$0xff] %v759_v22  ;;  %v516_v60 = vld [vmem:[%s1486_s6 + $0xd0] sm:$0xff]  ;;  %v517_v2 = vld [vmem:[%s1486_s6 + $0xd8] sm:$0xff] }
  0x5f   : > { %888 = vst [vmem:[%s1528_s7 + $0x68] sm:$0xff] %v760_v23  ;;  %v762_v35 = vadd.f32 %v634_v24, %v376_v18  ;;  %v379_v36 = vmul.f32 %v1491_v6, %v250_v19  ;;  %v637_v37 = vmul.f32 %v1497_v11, %v508_v20  ;;  %v380_v38 = vmul.f32 %v1491_v6, %v251_v21  ;;  %v518_v9 = vld [vmem:[%s1486_s6 + $0xe0] sm:$0xff]  ;;  %v261_v10 = vld [vmem:[%s1469_s30 + $0xe8] sm:$0xff]  ;;  %v262_v17 = vld [vmem:[%s1469_s30 + $0xf0] sm:$0xff] }
  0x60   : > { %889 = vst [vmem:[%s1528_s7 + $0x70] sm:$0xff] %v761_v28  ;;  %v763_v42 = vadd.f32 %v635_v29, %v377_v25  ;;  %v764_v43 = vadd.f32 %v636_v31, %v378_v30  ;;  %v638_v44 = vmul.f32 %v1497_v11, %v509_v26  ;;  %v381_v45 = vmul.f32 %v1491_v6, %v252_v27  ;;  %v519_v12 = vld [vmem:[%s1486_s6 + $0xe8] sm:$0xff]  ;;  %v520_v18 = vld [vmem:[%s1486_s6 + $0xf0] sm:$0xff]  ;;  %v263_v19 = vld [vmem:[%s1469_s30 + $0xf8] sm:$0xff] }
  0x61   : > { %890 = vst [vmem:[%s1528_s7 + $0x78] sm:$0xff] %v762_v35  ;;  %v765_v48 = vadd.f32 %v637_v37, %v379_v36  ;;  %v639_v49 = vmul.f32 %v1497_v11, %v510_v32  ;;  %v382_v50 = vmul.f32 %v1491_v6, %v253_v33  ;;  %v640_v51 = vmul.f32 %v1497_v11, %v511_v34  ;;  %v521_v24 = vld [vmem:[%s1486_s6 + $0xf8] sm:$0xff]  ;;  %v264_v25 = vld [vmem:[%s1469_s30 + $0x100] sm:$0xff]  ;;  %v265_v31 = vld [vmem:[%s1469_s30 + $0x108] sm:$0xff] }
  0x62   : > { %891 = vst [vmem:[%s1528_s7 + $0x80] sm:$0xff] %v763_v42  ;;  %892 = vst [vmem:[%s1528_s7 + $0x88] sm:$0xff] %v764_v43  ;;  %v766_v55 = vadd.f32 %v638_v44, %v380_v38  ;;  %v383_v56 = vmul.f32 %v1491_v6, %v254_v39  ;;  %v641_v57 = vmul.f32 %v1497_v11, %v512_v40  ;;  %v522_v30 = vld [vmem:[%s1486_s6 + $0x100] sm:$0xff]  ;;  %v523_v32 = vld [vmem:[%s1486_s6 + $0x108] sm:$0xff] }
  0x63   : > { %v384_v58 = vmul.f32 %v1491_v6, %v255_v41  ;;  %893 = vst [vmem:[%s1528_s7 + $0x90] sm:$0xff] %v765_v48  ;;  %v767_v62 = vadd.f32 %v639_v49, %v381_v45  ;;  %v768_v63 = vadd.f32 %v640_v51, %v382_v50  ;;  %v642_v0 = vmul.f32 %v1497_v11, %v513_v46  ;;  %v266_v37 = vld [vmem:[%s1469_s30 + $0x110] sm:$0xff]  ;;  %v267_v39 = vld [vmem:[%s1469_s30 + $0x118] sm:$0xff]  ;;  %v268_v45 = vld [vmem:[%s1469_s30 + $0x120] sm:$0xff] }
  0x64   : > { %v385_v1 = vmul.f32 %v1491_v6, %v256_v47  ;;  %894 = vst [vmem:[%s1528_s7 + $0x98] sm:$0xff] %v766_v55  ;;  %v769_v4 = vadd.f32 %v641_v57, %v383_v56  ;;  %v643_v5 = vmul.f32 %v1497_v11, %v514_v52  ;;  %v386_v7 = vmul.f32 %v1491_v6, %v257_v53  ;;  %v524_v38 = vld [vmem:[%s1486_s6 + $0x110] sm:$0xff]  ;;  %v525_v44 = vld [vmem:[%s1486_s6 + $0x118] sm:$0xff]  ;;  %v526_v50 = vld [vmem:[%s1486_s6 + $0x120] sm:$0xff] }
  0x65   : > { %v644_v8 = vmul.f32 %v1497_v11, %v515_v54  ;;  %895 = vst [vmem:[%s1528_s7 + $0xa0] sm:$0xff] %v767_v62  ;;  %896 = vst [vmem:[%s1528_s7 + $0xa8] sm:$0xff] %v768_v63  ;;  %v770_v13 = vadd.f32 %v642_v0, %v384_v58  ;;  %v387_v14 = vmul.f32 %v1491_v6, %v258_v59  ;;  %v269_v51 = vld [vmem:[%s1469_s30 + $0x128] sm:$0xff]  ;;  %v270_v57 = vld [vmem:[%s1469_s30 + $0x130] sm:$0xff] }
  0x66   : > { %v645_v15 = vmul.f32 %v1497_v11, %v516_v60  ;;  %v388_v16 = vmul.f32 %v1491_v6, %v259_v61  ;;  %897 = vst [vmem:[%s1528_s7 + $0xb0] sm:$0xff] %v769_v4  ;;  %v771_v20 = vadd.f32 %v643_v5, %v385_v1  ;;  %v646_v22 = vmul.f32 %v1497_v11, %v517_v2  ;;  %v527_v52 = vld [vmem:[%s1486_s6 + $0x128] sm:$0xff]  ;;  %v528_v58 = vld [vmem:[%s1486_s6 + $0x130] sm:$0xff]  ;;  %v271_v59 = vld [vmem:[%s1469_s30 + $0x138] sm:$0xff] }
  0x67   : > { %v772_v21 = vadd.f32 %v644_v8, %v386_v7  ;;  %v389_v23 = vmul.f32 %v1491_v6, %v260_v3  ;;  %898 = vst [vmem:[%s1528_s7 + $0xb8] sm:$0xff] %v770_v13  ;;  %v647_v27 = vmul.f32 %v1497_v11, %v518_v9  ;;  %v390_v28 = vmul.f32 %v1491_v6, %v261_v10  ;;  %v529_v0 = vld [vmem:[%s1486_s6 + $0x138] sm:$0xff]  ;;  %v272_v1 = vld [vmem:[%s1469_s30 + $0x140] sm:$0xff]  ;;  %v273_v8 = vld [vmem:[%s1469_s30 + $0x148] sm:$0xff] }
  0x68   : > { %v773_v26 = vadd.f32 %v645_v15, %v387_v14  ;;  %v648_v29 = vmul.f32 %v1497_v11, %v519_v12  ;;  %899 = vst [vmem:[%s1528_s7 + $0xc0] sm:$0xff] %v771_v20  ;;  %v774_v33 = vadd.f32 %v646_v22, %v388_v16  ;;  %v391_v34 = vmul.f32 %v1491_v6, %v262_v17  ;;  %v530_v7 = vld [vmem:[%s1486_s6 + $0x140] sm:$0xff]  ;;  %v531_v9 = vld [vmem:[%s1486_s6 + $0x148] sm:$0xff]  ;;  %v274_v15 = vld [vmem:[%s1469_s30 + $0x150] sm:$0xff] }
  0x69   : > { %900 = vst [vmem:[%s1528_s7 + $0xc8] sm:$0xff] %v772_v21  ;;  %v649_v35 = vmul.f32 %v1497_v11, %v520_v18  ;;  %v392_v36 = vmul.f32 %v1491_v6, %v263_v19  ;;  %v775_v40 = vadd.f32 %v647_v27, %v389_v23  ;;  %v650_v42 = vmul.f32 %v1497_v11, %v521_v24  ;;  %v532_v16 = vld [vmem:[%s1486_s6 + $0x150] sm:$0xff]  ;;  %v275_v17 = vld [vmem:[%s1469_s30 + $0x158] sm:$0xff]  ;;  %v276_v23 = vld [vmem:[%s1469_s30 + $0x160] sm:$0xff] }
  0x6a   : > { %901 = vst [vmem:[%s1528_s7 + $0xd0] sm:$0xff] %v773_v26  ;;  %v776_v41 = vadd.f32 %v648_v29, %v390_v28  ;;  %v393_v43 = vmul.f32 %v1491_v6, %v264_v25  ;;  %902 = vst [vmem:[%s1528_s7 + $0xd8] sm:$0xff] %v774_v33  ;;  %v651_v47 = vmul.f32 %v1497_v11, %v522_v30  ;;  %v533_v22 = vld [vmem:[%s1486_s6 + $0x158] sm:$0xff]  ;;  %v534_v28 = vld [vmem:[%s1486_s6 + $0x160] sm:$0xff] }
  0x6b   : > { %v777_v46 = vadd.f32 %v649_v35, %v391_v34  ;;  %v394_v48 = vmul.f32 %v1491_v6, %v265_v31  ;;  %v652_v49 = vmul.f32 %v1497_v11, %v523_v32  ;;  %903 = vst [vmem:[%s1528_s7 + $0xe0] sm:$0xff] %v775_v40  ;;  %v778_v53 = vadd.f32 %v650_v42, %v392_v36  ;;  %v277_v29 = vld [vmem:[%s1469_s30 + $0x168] sm:$0xff]  ;;  %v278_v35 = vld [vmem:[%s1469_s30 + $0x170] sm:$0xff]  ;;  %v537_v42 = vld [vmem:[%s1486_s6 + $0x178] sm:$0xff] }
  0x6c   : > { %904 = vst [vmem:[%s1528_s7 + $0xe8] sm:$0xff] %v776_v41  ;;  %v395_v54 = vmul.f32 %v1491_v6, %v266_v37  ;;  %v653_v55 = vmul.f32 %v1497_v11, %v524_v38  ;;  %v396_v56 = vmul.f32 %v1491_v6, %v267_v39  ;;  %v779_v60 = vadd.f32 %v651_v47, %v393_v43  ;;  %v535_v30 = vld [vmem:[%s1486_s6 + $0x168] sm:$0xff]  ;;  %v536_v36 = vld [vmem:[%s1486_s6 + $0x170] sm:$0xff]  ;;  %v279_v37 = vld [vmem:[%s1469_s30 + $0x178] sm:$0xff] }
  0x6d   : > { %905 = vst [vmem:[%s1528_s7 + $0xf0] sm:$0xff] %v777_v46  ;;  %v780_v61 = vadd.f32 %v652_v49, %v394_v48  ;;  %v654_v62 = vmul.f32 %v1497_v11, %v525_v44  ;;  %v397_v63 = vmul.f32 %v1491_v6, %v268_v45  ;;  %906 = vst [vmem:[%s1528_s7 + $0xf8] sm:$0xff] %v778_v53  ;;  %v280_v43 = vld [vmem:[%s1469_s30 + $0x180] sm:$0xff]  ;;  %v281_v49 = vld [vmem:[%s1469_s30 + $0x188] sm:$0xff] }
  0x6e   : > { %v781_v2 = vadd.f32 %v653_v55, %v395_v54  ;;  %v655_v3 = vmul.f32 %v1497_v11, %v526_v50  ;;  %v398_v4 = vmul.f32 %v1491_v6, %v269_v51  ;;  %v656_v5 = vmul.f32 %v1497_v11, %v527_v52  ;;  %907 = vst [vmem:[%s1528_s7 + $0x100] sm:$0xff] %v779_v60  ;;  %v538_v48 = vld [vmem:[%s1486_s6 + $0x180] sm:$0xff]  ;;  %v539_v50 = vld [vmem:[%s1486_s6 + $0x188] sm:$0xff]  ;;  %v282_v55 = vld [vmem:[%s1469_s30 + $0x190] sm:$0xff] }
  0x6f   : > { %908 = vst [vmem:[%s1528_s7 + $0x108] sm:$0xff] %v780_v61  ;;  %v782_v10 = vadd.f32 %v654_v62, %v396_v56  ;;  %v399_v12 = vmul.f32 %v1491_v6, %v270_v57  ;;  %v657_v13 = vmul.f32 %v1497_v11, %v528_v58  ;;  %v400_v14 = vmul.f32 %v1491_v6, %v271_v59  ;;  %v540_v56 = vld [vmem:[%s1486_s6 + $0x190] sm:$0xff]  ;;  %v283_v57 = vld [vmem:[%s1469_s30 + $0x198] sm:$0xff] }
  0x70   : > { %909 = vst [vmem:[%s1528_s7 + $0x110] sm:$0xff] %v781_v2  ;;  %v783_v18 = vadd.f32 %v655_v3, %v397_v63  ;;  %v784_v19 = vadd.f32 %v656_v5, %v398_v4  ;;  %v658_v20 = vmul.f32 %v1497_v11, %v529_v0  ;;  %v401_v21 = vmul.f32 %v1491_v6, %v272_v1  ;;  %v541_v62 = vld [vmem:[%s1486_s6 + $0x198] sm:$0xff]  ;;  %v284_v63 = vld [vmem:[%s1469_s30 + $0x1a0] sm:$0xff]  ;;  %v285_v5 = vld [vmem:[%s1469_s30 + $0x1a8] sm:$0xff] }
  0x71   : > { %910 = vst [vmem:[%s1528_s7 + $0x118] sm:$0xff] %v782_v10  ;;  %v785_v24 = vadd.f32 %v657_v13, %v399_v12  ;;  %v659_v25 = vmul.f32 %v1497_v11, %v530_v7  ;;  %v402_v26 = vmul.f32 %v1491_v6, %v273_v8  ;;  %v660_v27 = vmul.f32 %v1497_v11, %v531_v9  ;;  %v542_v4 = vld [vmem:[%s1486_s6 + $0x1a0] sm:$0xff]  ;;  %v543_v7 = vld [vmem:[%s1486_s6 + $0x1a8] sm:$0xff]  ;;  %v286_v13 = vld [vmem:[%s1469_s30 + $0x1b0] sm:$0xff] }
  0x72   : > { %911 = vst [vmem:[%s1528_s7 + $0x120] sm:$0xff] %v783_v18  ;;  %912 = vst [vmem:[%s1528_s7 + $0x128] sm:$0xff] %v784_v19  ;;  %v786_v31 = vadd.f32 %v658_v20, %v400_v14  ;;  %v403_v32 = vmul.f32 %v1491_v6, %v274_v15  ;;  %v661_v33 = vmul.f32 %v1497_v11, %v532_v16  ;;  %v544_v14 = vld [vmem:[%s1486_s6 + $0x1b0] sm:$0xff]  ;;  %v287_v15 = vld [vmem:[%s1469_s30 + $0x1b8] sm:$0xff] }
  0x73   : > { %v404_v34 = vmul.f32 %v1491_v6, %v275_v17  ;;  %913 = vst [vmem:[%s1528_s7 + $0x130] sm:$0xff] %v785_v24  ;;  %v787_v38 = vadd.f32 %v659_v25, %v401_v21  ;;  %v788_v39 = vadd.f32 %v660_v27, %v402_v26  ;;  %v662_v40 = vmul.f32 %v1497_v11, %v533_v22  ;;  %v545_v20 = vld [vmem:[%s1486_s6 + $0x1b8] sm:$0xff]  ;;  %v288_v21 = vld [vmem:[%s1469_s30 + $0x1c0] sm:$0xff]  ;;  %v289_v27 = vld [vmem:[%s1469_s30 + $0x1c8] sm:$0xff] }
  0x74   : > { %v405_v41 = vmul.f32 %v1491_v6, %v276_v23  ;;  %914 = vst [vmem:[%s1528_s7 + $0x138] sm:$0xff] %v786_v31  ;;  %v789_v44 = vadd.f32 %v661_v33, %v403_v32  ;;  %v663_v45 = vmul.f32 %v1497_v11, %v534_v28  ;;  %v406_v46 = vmul.f32 %v1491_v6, %v277_v29  ;;  %v546_v26 = vld [vmem:[%s1486_s6 + $0x1c0] sm:$0xff]  ;;  %v547_v28 = vld [vmem:[%s1486_s6 + $0x1c8] sm:$0xff]  ;;  %v290_v33 = vld [vmem:[%s1469_s30 + $0x1d0] sm:$0xff] }
  0x75   : > { %v664_v47 = vmul.f32 %v1497_v11, %v535_v30  ;;  %915 = vst [vmem:[%s1528_s7 + $0x140] sm:$0xff] %v787_v38  ;;  %916 = vst [vmem:[%s1528_s7 + $0x148] sm:$0xff] %v788_v39  ;;  %v790_v51 = vadd.f32 %v662_v40, %v404_v34  ;;  %v407_v52 = vmul.f32 %v1491_v6, %v278_v35  ;;  %v548_v34 = vld [vmem:[%s1486_s6 + $0x1d0] sm:$0xff]  ;;  %v291_v35 = vld [vmem:[%s1469_s30 + $0x1d8] sm:$0xff] }
  0x76   : > { %v665_v53 = vmul.f32 %v1497_v11, %v536_v36  ;;  %v408_v54 = vmul.f32 %v1491_v6, %v279_v37  ;;  %917 = vst [vmem:[%s1528_s7 + $0x150] sm:$0xff] %v789_v44  ;;  %v791_v58 = vadd.f32 %v663_v45, %v405_v41  ;;  %v666_v60 = vmul.f32 %v1497_v11, %v537_v42  ;;  %v549_v40 = vld [vmem:[%s1486_s6 + $0x1d8] sm:$0xff]  ;;  %v292_v41 = vld [vmem:[%s1469_s30 + $0x1e0] sm:$0xff] }
  0x77   : > { %v792_v59 = vadd.f32 %v664_v47, %v406_v46  ;;  %v409_v61 = vmul.f32 %v1491_v6, %v280_v43  ;;  %918 = vst [vmem:[%s1528_s7 + $0x158] sm:$0xff] %v790_v51  ;;  %v667_v1 = vmul.f32 %v1497_v11, %v538_v48  ;;  %v410_v2 = vmul.f32 %v1491_v6, %v281_v49  ;;  %v550_v46 = vld [vmem:[%s1486_s6 + $0x1e0] sm:$0xff]  ;;  %v293_v47 = vld [vmem:[%s1469_s30 + $0x1e8] sm:$0xff] }
  0x78   : > { %v793_v0 = vadd.f32 %v665_v53, %v407_v52  ;;  %v668_v3 = vmul.f32 %v1497_v11, %v539_v50  ;;  %919 = vst [vmem:[%s1528_s7 + $0x160] sm:$0xff] %v791_v58  ;;  %v794_v8 = vadd.f32 %v666_v60, %v408_v54  ;;  %v411_v9 = vmul.f32 %v1491_v6, %v282_v55  ;;  %v551_v48 = vld [vmem:[%s1486_s6 + $0x1e8] sm:$0xff]  ;;  %v294_v53 = vld [vmem:[%s1469_s30 + $0x1f0] sm:$0xff]  ;;  %v295_v55 = vld [vmem:[%s1469_s30 + $0x1f8] sm:$0xff] }
  0x79   : > { %920 = vst [vmem:[%s1528_s7 + $0x168] sm:$0xff] %v792_v59  ;;  %v669_v10 = vmul.f32 %v1497_v11, %v540_v56  ;;  %v412_v12 = vmul.f32 %v1491_v6, %v283_v57  ;;  %v795_v16 = vadd.f32 %v667_v1, %v409_v61  ;;  %v670_v18 = vmul.f32 %v1497_v11, %v541_v62  ;;  %v552_v54 = vld [vmem:[%s1486_s6 + $0x1f0] sm:$0xff]  ;;  %v553_v60 = vld [vmem:[%s1486_s6 + $0x1f8] sm:$0xff]  ;;  %v296_v61 = vld [vmem:[%s1469_s30 + $0x200] sm:$0xff] }
  0x7a   : > { %921 = vst [vmem:[%s1528_s7 + $0x170] sm:$0xff] %v793_v0  ;;  %v796_v17 = vadd.f32 %v668_v3, %v410_v2  ;;  %v413_v19 = vmul.f32 %v1491_v6, %v284_v63  ;;  %922 = vst [vmem:[%s1528_s7 + $0x178] sm:$0xff] %v794_v8  ;;  %v671_v23 = vmul.f32 %v1497_v11, %v542_v4  ;;  %v554_v2 = vld [vmem:[%s1486_s6 + $0x200] sm:$0xff]  ;;  %v297_v3 = vld [vmem:[%s1469_s30 + $0x208] sm:$0xff] }
  0x7b   : > { %v797_v22 = vadd.f32 %v669_v10, %v411_v9  ;;  %v414_v24 = vmul.f32 %v1491_v6, %v285_v5  ;;  %v672_v25 = vmul.f32 %v1497_v11, %v543_v7  ;;  %923 = vst [vmem:[%s1528_s7 + $0x180] sm:$0xff] %v795_v16  ;;  %v798_v29 = vadd.f32 %v670_v18, %v412_v12  ;;  %v555_v4 = vld [vmem:[%s1486_s6 + $0x208] sm:$0xff]  ;;  %v298_v10 = vld [vmem:[%s1469_s30 + $0x210] sm:$0xff]  ;;  %v557_v18 = vld [vmem:[%s1486_s6 + $0x218] sm:$0xff] }
  0x7c   : > { %924 = vst [vmem:[%s1528_s7 + $0x188] sm:$0xff] %v796_v17  ;;  %v415_v30 = vmul.f32 %v1491_v6, %v286_v13  ;;  %v673_v31 = vmul.f32 %v1497_v11, %v544_v14  ;;  %v416_v32 = vmul.f32 %v1491_v6, %v287_v15  ;;  %v799_v36 = vadd.f32 %v671_v23, %v413_v19  ;;  %v556_v12 = vld [vmem:[%s1486_s6 + $0x210] sm:$0xff]  ;;  %v299_v13 = vld [vmem:[%s1469_s30 + $0x218] sm:$0xff]  ;;  %v300_v19 = vld [vmem:[%s1469_s30 + $0x220] sm:$0xff] }
  0x7d   : > { %925 = vst [vmem:[%s1528_s7 + $0x190] sm:$0xff] %v797_v22  ;;  %v800_v37 = vadd.f32 %v672_v25, %v414_v24  ;;  %v674_v38 = vmul.f32 %v1497_v11, %v545_v20  ;;  %v417_v39 = vmul.f32 %v1491_v6, %v288_v21  ;;  %926 = vst [vmem:[%s1528_s7 + $0x198] sm:$0xff] %v798_v29  ;;  %v558_v24 = vld [vmem:[%s1486_s6 + $0x220] sm:$0xff]  ;;  %v301_v25 = vld [vmem:[%s1469_s30 + $0x228] sm:$0xff] }
  0x7e   : > { %v801_v42 = vadd.f32 %v673_v31, %v415_v30  ;;  %v675_v43 = vmul.f32 %v1497_v11, %v546_v26  ;;  %v418_v44 = vmul.f32 %v1491_v6, %v289_v27  ;;  %v676_v45 = vmul.f32 %v1497_v11, %v547_v28  ;;  %927 = vst [vmem:[%s1528_s7 + $0x1a0] sm:$0xff] %v799_v36  ;;  %v559_v26 = vld [vmem:[%s1486_s6 + $0x228] sm:$0xff]  ;;  %v302_v31 = vld [vmem:[%s1469_s30 + $0x230] sm:$0xff] }
  0x7f   : > { %928 = vst [vmem:[%s1528_s7 + $0x1a8] sm:$0xff] %v800_v37  ;;  %v802_v49 = vadd.f32 %v674_v38, %v416_v32  ;;  %v419_v50 = vmul.f32 %v1491_v6, %v290_v33  ;;  %v677_v51 = vmul.f32 %v1497_v11, %v548_v34  ;;  %v420_v52 = vmul.f32 %v1491_v6, %v291_v35  ;;  %v560_v32 = vld [vmem:[%s1486_s6 + $0x230] sm:$0xff]  ;;  %v303_v33 = vld [vmem:[%s1469_s30 + $0x238] sm:$0xff] }
  0x80   : > { %929 = vst [vmem:[%s1528_s7 + $0x1b0] sm:$0xff] %v801_v42  ;;  %v803_v56 = vadd.f32 %v675_v43, %v417_v39  ;;  %v804_v57 = vadd.f32 %v676_v45, %v418_v44  ;;  %v678_v58 = vmul.f32 %v1497_v11, %v549_v40  ;;  %v421_v59 = vmul.f32 %v1491_v6, %v292_v41  ;;  %v561_v38 = vld [vmem:[%s1486_s6 + $0x238] sm:$0xff]  ;;  %v304_v39 = vld [vmem:[%s1469_s30 + $0x240] sm:$0xff]  ;;  %v305_v45 = vld [vmem:[%s1469_s30 + $0x248] sm:$0xff] }
  0x81   : > { %930 = vst [vmem:[%s1528_s7 + $0x1b8] sm:$0xff] %v802_v49  ;;  %v805_v62 = vadd.f32 %v677_v51, %v419_v50  ;;  %v679_v63 = vmul.f32 %v1497_v11, %v550_v46  ;;  %v422_v0 = vmul.f32 %v1491_v6, %v293_v47  ;;  %v680_v1 = vmul.f32 %v1497_v11, %v551_v48  ;;  %v562_v44 = vld [vmem:[%s1486_s6 + $0x240] sm:$0xff]  ;;  %v563_v46 = vld [vmem:[%s1486_s6 + $0x248] sm:$0xff]  ;;  %v306_v51 = vld [vmem:[%s1469_s30 + $0x250] sm:$0xff] }
  0x82   : > { %931 = vst [vmem:[%s1528_s7 + $0x1c0] sm:$0xff] %v803_v56  ;;  %932 = vst [vmem:[%s1528_s7 + $0x1c8] sm:$0xff] %v804_v57  ;;  %v806_v5 = vadd.f32 %v678_v58, %v420_v52  ;;  %v423_v7 = vmul.f32 %v1491_v6, %v294_v53  ;;  %v681_v8 = vmul.f32 %v1497_v11, %v552_v54  ;;  %v564_v52 = vld [vmem:[%s1486_s6 + $0x250] sm:$0xff]  ;;  %v307_v53 = vld [vmem:[%s1469_s30 + $0x258] sm:$0xff] }
  0x83   : > { %v424_v9 = vmul.f32 %v1491_v6, %v295_v55  ;;  %933 = vst [vmem:[%s1528_s7 + $0x1d0] sm:$0xff] %v805_v62  ;;  %v807_v14 = vadd.f32 %v679_v63, %v421_v59  ;;  %v808_v15 = vadd.f32 %v680_v1, %v422_v0  ;;  %v682_v16 = vmul.f32 %v1497_v11, %v553_v60  ;;  %v565_v58 = vld [vmem:[%s1486_s6 + $0x258] sm:$0xff]  ;;  %v308_v59 = vld [vmem:[%s1469_s30 + $0x260] sm:$0xff]  ;;  %v309_v1 = vld [vmem:[%s1469_s30 + $0x268] sm:$0xff] }
  0x84   : > { %v425_v17 = vmul.f32 %v1491_v6, %v296_v61  ;;  %934 = vst [vmem:[%s1528_s7 + $0x1d8] sm:$0xff] %v806_v5  ;;  %v809_v20 = vadd.f32 %v681_v8, %v423_v7  ;;  %v683_v21 = vmul.f32 %v1497_v11, %v554_v2  ;;  %v426_v22 = vmul.f32 %v1491_v6, %v297_v3  ;;  %v566_v0 = vld [vmem:[%s1486_s6 + $0x260] sm:$0xff]  ;;  %v567_v2 = vld [vmem:[%s1486_s6 + $0x268] sm:$0xff]  ;;  %v310_v8 = vld [vmem:[%s1469_s30 + $0x270] sm:$0xff] }
  0x85   : > { %v684_v23 = vmul.f32 %v1497_v11, %v555_v4  ;;  %935 = vst [vmem:[%s1528_s7 + $0x1e0] sm:$0xff] %v807_v14  ;;  %936 = vst [vmem:[%s1528_s7 + $0x1e8] sm:$0xff] %v808_v15  ;;  %v810_v27 = vadd.f32 %v682_v16, %v424_v9  ;;  %v427_v28 = vmul.f32 %v1491_v6, %v298_v10  ;;  %v568_v9 = vld [vmem:[%s1486_s6 + $0x270] sm:$0xff]  ;;  %v311_v10 = vld [vmem:[%s1469_s30 + $0x278] sm:$0xff] }
  0x86   : > { %v685_v29 = vmul.f32 %v1497_v11, %v556_v12  ;;  %v428_v30 = vmul.f32 %v1491_v6, %v299_v13  ;;  %937 = vst [vmem:[%s1528_s7 + $0x1f0] sm:$0xff] %v809_v20  ;;  %v811_v34 = vadd.f32 %v683_v21, %v425_v17  ;;  %v686_v36 = vmul.f32 %v1497_v11, %v557_v18  ;;  %v569_v16 = vld [vmem:[%s1486_s6 + $0x278] sm:$0xff]  ;;  %v312_v17 = vld [vmem:[%s1469_s30 + $0x280] sm:$0xff] }
  0x87   : > { %v812_v35 = vadd.f32 %v684_v23, %v426_v22  ;;  %v429_v37 = vmul.f32 %v1491_v6, %v300_v19  ;;  %938 = vst [vmem:[%s1528_s7 + $0x1f8] sm:$0xff] %v810_v27  ;;  %v687_v41 = vmul.f32 %v1497_v11, %v558_v24  ;;  %v430_v42 = vmul.f32 %v1491_v6, %v301_v25  ;;  %v570_v22 = vld [vmem:[%s1486_s6 + $0x280] sm:$0xff]  ;;  %v313_v23 = vld [vmem:[%s1469_s30 + $0x288] sm:$0xff] }
  0x88   : > { %v813_v40 = vadd.f32 %v685_v29, %v427_v28  ;;  %v688_v43 = vmul.f32 %v1497_v11, %v559_v26  ;;  %939 = vst [vmem:[%s1528_s7 + $0x200] sm:$0xff] %v811_v34  ;;  %v814_v47 = vadd.f32 %v686_v36, %v428_v30  ;;  %v431_v48 = vmul.f32 %v1491_v6, %v302_v31  ;;  %v571_v24 = vld [vmem:[%s1486_s6 + $0x288] sm:$0xff]  ;;  %v314_v29 = vld [vmem:[%s1469_s30 + $0x290] sm:$0xff]  ;;  %v315_v31 = vld [vmem:[%s1469_s30 + $0x298] sm:$0xff] }
  0x89   : > { %940 = vst [vmem:[%s1528_s7 + $0x208] sm:$0xff] %v812_v35  ;;  %v689_v49 = vmul.f32 %v1497_v11, %v560_v32  ;;  %v432_v50 = vmul.f32 %v1491_v6, %v303_v33  ;;  %v815_v54 = vadd.f32 %v687_v41, %v429_v37  ;;  %v690_v56 = vmul.f32 %v1497_v11, %v561_v38  ;;  %v572_v30 = vld [vmem:[%s1486_s6 + $0x290] sm:$0xff]  ;;  %v573_v36 = vld [vmem:[%s1486_s6 + $0x298] sm:$0xff]  ;;  %v316_v37 = vld [vmem:[%s1469_s30 + $0x2a0] sm:$0xff] }
  0x8a   : > { %941 = vst [vmem:[%s1528_s7 + $0x210] sm:$0xff] %v813_v40  ;;  %v816_v55 = vadd.f32 %v688_v43, %v430_v42  ;;  %v433_v57 = vmul.f32 %v1491_v6, %v304_v39  ;;  %942 = vst [vmem:[%s1528_s7 + $0x218] sm:$0xff] %v814_v47  ;;  %v691_v61 = vmul.f32 %v1497_v11, %v562_v44  ;;  %v574_v42 = vld [vmem:[%s1486_s6 + $0x2a0] sm:$0xff]  ;;  %v317_v43 = vld [vmem:[%s1469_s30 + $0x2a8] sm:$0xff] }
  0x8b   : > { %v817_v60 = vadd.f32 %v689_v49, %v431_v48  ;;  %v434_v62 = vmul.f32 %v1491_v6, %v305_v45  ;;  %v692_v63 = vmul.f32 %v1497_v11, %v563_v46  ;;  %943 = vst [vmem:[%s1528_s7 + $0x220] sm:$0xff] %v815_v54  ;;  %v818_v3 = vadd.f32 %v690_v56, %v432_v50  ;;  %v575_v44 = vld [vmem:[%s1486_s6 + $0x2a8] sm:$0xff]  ;;  %v318_v49 = vld [vmem:[%s1469_s30 + $0x2b0] sm:$0xff]  ;;  %v577_v56 = vld [vmem:[%s1486_s6 + $0x2b8] sm:$0xff] }
  0x8c   : > { %944 = vst [vmem:[%s1528_s7 + $0x228] sm:$0xff] %v816_v55  ;;  %v435_v4 = vmul.f32 %v1491_v6, %v306_v51  ;;  %v693_v5 = vmul.f32 %v1497_v11, %v564_v52  ;;  %v436_v7 = vmul.f32 %v1491_v6, %v307_v53  ;;  %v819_v12 = vadd.f32 %v691_v61, %v433_v57  ;;  %v576_v50 = vld [vmem:[%s1486_s6 + $0x2b0] sm:$0xff]  ;;  %v319_v51 = vld [vmem:[%s1469_s30 + $0x2b8] sm:$0xff]  ;;  %v320_v57 = vld [vmem:[%s1469_s30 + $0x2c0] sm:$0xff] }
  0x8d   : > { %945 = vst [vmem:[%s1528_s7 + $0x230] sm:$0xff] %v817_v60  ;;  %v820_v13 = vadd.f32 %v692_v63, %v434_v62  ;;  %v694_v14 = vmul.f32 %v1497_v11, %v565_v58  ;;  %v437_v15 = vmul.f32 %v1491_v6, %v308_v59  ;;  %946 = vst [vmem:[%s1528_s7 + $0x238] sm:$0xff] %v818_v3  ;;  %v578_v62 = vld [vmem:[%s1486_s6 + $0x2c0] sm:$0xff]  ;;  %v321_v63 = vld [vmem:[%s1469_s30 + $0x2c8] sm:$0xff] }
  0x8e   : > { %v821_v18 = vadd.f32 %v693_v5, %v435_v4  ;;  %v695_v19 = vmul.f32 %v1497_v11, %v566_v0  ;;  %v438_v20 = vmul.f32 %v1491_v6, %v309_v1  ;;  %v696_v21 = vmul.f32 %v1497_v11, %v567_v2  ;;  %947 = vst [vmem:[%s1528_s7 + $0x240] sm:$0xff] %v819_v12  ;;  %v579_v0 = vld [vmem:[%s1486_s6 + $0x2c8] sm:$0xff]  ;;  %v322_v5 = vld [vmem:[%s1469_s30 + $0x2d0] sm:$0xff] }
  0x8f   : > { %948 = vst [vmem:[%s1528_s7 + $0x248] sm:$0xff] %v820_v13  ;;  %v822_v25 = vadd.f32 %v694_v14, %v436_v7  ;;  %v439_v26 = vmul.f32 %v1491_v6, %v310_v8  ;;  %v697_v27 = vmul.f32 %v1497_v11, %v568_v9  ;;  %v440_v28 = vmul.f32 %v1491_v6, %v311_v10  ;;  %v580_v7 = vld [vmem:[%s1486_s6 + $0x2d0] sm:$0xff]  ;;  %v323_v8 = vld [vmem:[%s1469_s30 + $0x2d8] sm:$0xff] }
  0x90   : > { %949 = vst [vmem:[%s1528_s7 + $0x250] sm:$0xff] %v821_v18  ;;  %v823_v32 = vadd.f32 %v695_v19, %v437_v15  ;;  %v824_v33 = vadd.f32 %v696_v21, %v438_v20  ;;  %v698_v34 = vmul.f32 %v1497_v11, %v569_v16  ;;  %v441_v35 = vmul.f32 %v1491_v6, %v312_v17  ;;  %v581_v14 = vld [vmem:[%s1486_s6 + $0x2d8] sm:$0xff]  ;;  %v324_v15 = vld [vmem:[%s1469_s30 + $0x2e0] sm:$0xff]  ;;  %v325_v21 = vld [vmem:[%s1469_s30 + $0x2e8] sm:$0xff] }
  0x91   : > { %950 = vst [vmem:[%s1528_s7 + $0x258] sm:$0xff] %v822_v25  ;;  %v825_v38 = vadd.f32 %v697_v27, %v439_v26  ;;  %v699_v39 = vmul.f32 %v1497_v11, %v570_v22  ;;  %v442_v40 = vmul.f32 %v1491_v6, %v313_v23  ;;  %v700_v41 = vmul.f32 %v1497_v11, %v571_v24  ;;  %v582_v20 = vld [vmem:[%s1486_s6 + $0x2e0] sm:$0xff]  ;;  %v583_v22 = vld [vmem:[%s1486_s6 + $0x2e8] sm:$0xff]  ;;  %v326_v27 = vld [vmem:[%s1469_s30 + $0x2f0] sm:$0xff] }
  0x92   : > { %951 = vst [vmem:[%s1528_s7 + $0x260] sm:$0xff] %v823_v32  ;;  %952 = vst [vmem:[%s1528_s7 + $0x268] sm:$0xff] %v824_v33  ;;  %v826_v45 = vadd.f32 %v698_v34, %v440_v28  ;;  %v443_v46 = vmul.f32 %v1491_v6, %v314_v29  ;;  %v701_v47 = vmul.f32 %v1497_v11, %v572_v30  ;;  %v584_v28 = vld [vmem:[%s1486_s6 + $0x2f0] sm:$0xff]  ;;  %v327_v29 = vld [vmem:[%s1469_s30 + $0x2f8] sm:$0xff] }
  0x93   : > { %v444_v48 = vmul.f32 %v1491_v6, %v315_v31  ;;  %953 = vst [vmem:[%s1528_s7 + $0x270] sm:$0xff] %v825_v38  ;;  %v827_v52 = vadd.f32 %v699_v39, %v441_v35  ;;  %v828_v53 = vadd.f32 %v700_v41, %v442_v40  ;;  %v702_v54 = vmul.f32 %v1497_v11, %v573_v36  ;;  %v585_v34 = vld [vmem:[%s1486_s6 + $0x2f8] sm:$0xff]  ;;  %v328_v35 = vld [vmem:[%s1469_s30 + $0x300] sm:$0xff]  ;;  %v329_v41 = vld [vmem:[%s1469_s30 + $0x308] sm:$0xff] }
  0x94   : > { %v445_v55 = vmul.f32 %v1491_v6, %v316_v37  ;;  %954 = vst [vmem:[%s1528_s7 + $0x278] sm:$0xff] %v826_v45  ;;  %v829_v58 = vadd.f32 %v701_v47, %v443_v46  ;;  %v703_v59 = vmul.f32 %v1497_v11, %v574_v42  ;;  %v446_v60 = vmul.f32 %v1491_v6, %v317_v43  ;;  %v586_v40 = vld [vmem:[%s1486_s6 + $0x300] sm:$0xff]  ;;  %v587_v42 = vld [vmem:[%s1486_s6 + $0x308] sm:$0xff]  ;;  %v330_v47 = vld [vmem:[%s1469_s30 + $0x310] sm:$0xff] }
  0x95   : > { %v704_v61 = vmul.f32 %v1497_v11, %v575_v44  ;;  %955 = vst [vmem:[%s1528_s7 + $0x280] sm:$0xff] %v827_v52  ;;  %956 = vst [vmem:[%s1528_s7 + $0x288] sm:$0xff] %v828_v53  ;;  %v830_v1 = vadd.f32 %v702_v54, %v444_v48  ;;  %v447_v2 = vmul.f32 %v1491_v6, %v318_v49  ;;  %v588_v48 = vld [vmem:[%s1486_s6 + $0x310] sm:$0xff]  ;;  %v331_v49 = vld [vmem:[%s1469_s30 + $0x318] sm:$0xff] }
  0x96   : > { %v705_v3 = vmul.f32 %v1497_v11, %v576_v50  ;;  %v448_v4 = vmul.f32 %v1491_v6, %v319_v51  ;;  %957 = vst [vmem:[%s1528_s7 + $0x290] sm:$0xff] %v829_v58  ;;  %v831_v9 = vadd.f32 %v703_v59, %v445_v55  ;;  %v706_v12 = vmul.f32 %v1497_v11, %v577_v56  ;;  %v589_v54 = vld [vmem:[%s1486_s6 + $0x318] sm:$0xff]  ;;  %v332_v55 = vld [vmem:[%s1469_s30 + $0x320] sm:$0xff] }
  0x97   : > { %v832_v10 = vadd.f32 %v704_v61, %v446_v60  ;;  %v449_v13 = vmul.f32 %v1491_v6, %v320_v57  ;;  %958 = vst [vmem:[%s1528_s7 + $0x298] sm:$0xff] %v830_v1  ;;  %v707_v17 = vmul.f32 %v1497_v11, %v578_v62  ;;  %v450_v18 = vmul.f32 %v1491_v6, %v321_v63  ;;  %v590_v60 = vld [vmem:[%s1486_s6 + $0x320] sm:$0xff]  ;;  %v333_v61 = vld [vmem:[%s1469_s30 + $0x328] sm:$0xff] }
  0x98   : > { %v833_v16 = vadd.f32 %v705_v3, %v447_v2  ;;  %v708_v19 = vmul.f32 %v1497_v11, %v579_v0  ;;  %959 = vst [vmem:[%s1528_s7 + $0x2a0] sm:$0xff] %v831_v9  ;;  %v834_v23 = vadd.f32 %v706_v12, %v448_v4  ;;  %v451_v24 = vmul.f32 %v1491_v6, %v322_v5  ;;  %v591_v62 = vld [vmem:[%s1486_s6 + $0x328] sm:$0xff]  ;;  %v334_v3 = vld [vmem:[%s1469_s30 + $0x330] sm:$0xff]  ;;  %v335_v5 = vld [vmem:[%s1469_s30 + $0x338] sm:$0xff] }
  0x99   : > { %960 = vst [vmem:[%s1528_s7 + $0x2a8] sm:$0xff] %v832_v10  ;;  %v709_v25 = vmul.f32 %v1497_v11, %v580_v7  ;;  %v452_v26 = vmul.f32 %v1491_v6, %v323_v8  ;;  %v835_v30 = vadd.f32 %v707_v17, %v449_v13  ;;  %v710_v32 = vmul.f32 %v1497_v11, %v581_v14  ;;  %v592_v4 = vld [vmem:[%s1486_s6 + $0x330] sm:$0xff]  ;;  %v593_v12 = vld [vmem:[%s1486_s6 + $0x338] sm:$0xff]  ;;  %v336_v13 = vld [vmem:[%s1469_s30 + $0x340] sm:$0xff] }
  0x9a   : > { %961 = vst [vmem:[%s1528_s7 + $0x2b0] sm:$0xff] %v833_v16  ;;  %v836_v31 = vadd.f32 %v708_v19, %v450_v18  ;;  %v453_v33 = vmul.f32 %v1491_v6, %v324_v15  ;;  %962 = vst [vmem:[%s1528_s7 + $0x2b8] sm:$0xff] %v834_v23  ;;  %v711_v37 = vmul.f32 %v1497_v11, %v582_v20  ;;  %v594_v18 = vld [vmem:[%s1486_s6 + $0x340] sm:$0xff]  ;;  %v337_v19 = vld [vmem:[%s1469_s30 + $0x348] sm:$0xff] }
  0x9b   : > { %v837_v36 = vadd.f32 %v709_v25, %v451_v24  ;;  %v454_v38 = vmul.f32 %v1491_v6, %v325_v21  ;;  %v712_v39 = vmul.f32 %v1497_v11, %v583_v22  ;;  %963 = vst [vmem:[%s1528_s7 + $0x2c0] sm:$0xff] %v835_v30  ;;  %v838_v43 = vadd.f32 %v710_v32, %v452_v26  ;;  %v595_v20 = vld [vmem:[%s1486_s6 + $0x348] sm:$0xff]  ;;  %v338_v25 = vld [vmem:[%s1469_s30 + $0x350] sm:$0xff]  ;;  %v597_v32 = vld [vmem:[%s1486_s6 + $0x358] sm:$0xff] }
  0x9c   : > { %964 = vst [vmem:[%s1528_s7 + $0x2c8] sm:$0xff] %v836_v31  ;;  %v455_v44 = vmul.f32 %v1491_v6, %v326_v27  ;;  %v713_v45 = vmul.f32 %v1497_v11, %v584_v28  ;;  %v456_v46 = vmul.f32 %v1491_v6, %v327_v29  ;;  %v839_v50 = vadd.f32 %v711_v37, %v453_v33  ;;  %v596_v26 = vld [vmem:[%s1486_s6 + $0x350] sm:$0xff]  ;;  %v339_v27 = vld [vmem:[%s1469_s30 + $0x358] sm:$0xff]  ;;  %v340_v33 = vld [vmem:[%s1469_s30 + $0x360] sm:$0xff] }
  0x9d   : > { %965 = vst [vmem:[%s1528_s7 + $0x2d0] sm:$0xff] %v837_v36  ;;  %v840_v51 = vadd.f32 %v712_v39, %v454_v38  ;;  %v714_v52 = vmul.f32 %v1497_v11, %v585_v34  ;;  %v457_v53 = vmul.f32 %v1491_v6, %v328_v35  ;;  %966 = vst [vmem:[%s1528_s7 + $0x2d8] sm:$0xff] %v838_v43  ;;  %v598_v38 = vld [vmem:[%s1486_s6 + $0x360] sm:$0xff]  ;;  %v341_v39 = vld [vmem:[%s1469_s30 + $0x368] sm:$0xff] }
  0x9e   : > { %v841_v56 = vadd.f32 %v713_v45, %v455_v44  ;;  %v715_v57 = vmul.f32 %v1497_v11, %v586_v40  ;;  %v458_v58 = vmul.f32 %v1491_v6, %v329_v41  ;;  %v716_v59 = vmul.f32 %v1497_v11, %v587_v42  ;;  %967 = vst [vmem:[%s1528_s7 + $0x2e0] sm:$0xff] %v839_v50  ;;  %v599_v40 = vld [vmem:[%s1486_s6 + $0x368] sm:$0xff]  ;;  %v342_v45 = vld [vmem:[%s1469_s30 + $0x370] sm:$0xff] }
  0x9f   : > { %968 = vst [vmem:[%s1528_s7 + $0x2e8] sm:$0xff] %v840_v51  ;;  %v842_v63 = vadd.f32 %v714_v52, %v456_v46  ;;  %v459_v0 = vmul.f32 %v1491_v6, %v330_v47  ;;  %v717_v1 = vmul.f32 %v1497_v11, %v588_v48  ;;  %v460_v2 = vmul.f32 %v1491_v6, %v331_v49  ;;  %v600_v46 = vld [vmem:[%s1486_s6 + $0x370] sm:$0xff]  ;;  %v343_v47 = vld [vmem:[%s1469_s30 + $0x378] sm:$0xff] }
  0xa0   : > { %969 = vst [vmem:[%s1528_s7 + $0x2f0] sm:$0xff] %v841_v56  ;;  %v843_v7 = vadd.f32 %v715_v57, %v457_v53  ;;  %v844_v8 = vadd.f32 %v716_v59, %v458_v58  ;;  %v718_v9 = vmul.f32 %v1497_v11, %v589_v54  ;;  %v461_v10 = vmul.f32 %v1491_v6, %v332_v55  ;;  %v601_v52 = vld [vmem:[%s1486_s6 + $0x378] sm:$0xff]  ;;  %v344_v53 = vld [vmem:[%s1469_s30 + $0x380] sm:$0xff]  ;;  %v345_v59 = vld [vmem:[%s1469_s30 + $0x388] sm:$0xff] }
  0xa1   : > { %970 = vst [vmem:[%s1528_s7 + $0x2f8] sm:$0xff] %v842_v63  ;;  %v845_v14 = vadd.f32 %v717_v1, %v459_v0  ;;  %v719_v15 = vmul.f32 %v1497_v11, %v590_v60  ;;  %v462_v16 = vmul.f32 %v1491_v6, %v333_v61  ;;  %v720_v17 = vmul.f32 %v1497_v11, %v591_v62  ;;  %v602_v58 = vld [vmem:[%s1486_s6 + $0x380] sm:$0xff]  ;;  %v603_v60 = vld [vmem:[%s1486_s6 + $0x388] sm:$0xff]  ;;  %v346_v1 = vld [vmem:[%s1469_s30 + $0x390] sm:$0xff] }
  0xa2   : > { %971 = vst [vmem:[%s1528_s7 + $0x300] sm:$0xff] %v843_v7  ;;  %972 = vst [vmem:[%s1528_s7 + $0x308] sm:$0xff] %v844_v8  ;;  %v846_v21 = vadd.f32 %v718_v9, %v460_v2  ;;  %v463_v22 = vmul.f32 %v1491_v6, %v334_v3  ;;  %v721_v23 = vmul.f32 %v1497_v11, %v592_v4  ;;  %v604_v2 = vld [vmem:[%s1486_s6 + $0x390] sm:$0xff]  ;;  %v347_v3 = vld [vmem:[%s1469_s30 + $0x398] sm:$0xff] }
  0xa3   : > { %v464_v24 = vmul.f32 %v1491_v6, %v335_v5  ;;  %973 = vst [vmem:[%s1528_s7 + $0x310] sm:$0xff] %v845_v14  ;;  %v847_v28 = vadd.f32 %v719_v15, %v461_v10  ;;  %v848_v29 = vadd.f32 %v720_v17, %v462_v16  ;;  %v722_v30 = vmul.f32 %v1497_v11, %v593_v12  ;;  %v605_v9 = vld [vmem:[%s1486_s6 + $0x398] sm:$0xff]  ;;  %v348_v10 = vld [vmem:[%s1469_s30 + $0x3a0] sm:$0xff]  ;;  %v349_v17 = vld [vmem:[%s1469_s30 + $0x3a8] sm:$0xff] }
  0xa4   : > { %v465_v31 = vmul.f32 %v1491_v6, %v336_v13  ;;  %974 = vst [vmem:[%s1528_s7 + $0x318] sm:$0xff] %v846_v21  ;;  %v849_v34 = vadd.f32 %v721_v23, %v463_v22  ;;  %v723_v35 = vmul.f32 %v1497_v11, %v594_v18  ;;  %v466_v36 = vmul.f32 %v1491_v6, %v337_v19  ;;  %v606_v16 = vld [vmem:[%s1486_s6 + $0x3a0] sm:$0xff]  ;;  %v607_v18 = vld [vmem:[%s1486_s6 + $0x3a8] sm:$0xff]  ;;  %v350_v23 = vld [vmem:[%s1469_s30 + $0x3b0] sm:$0xff] }
  0xa5   : > { %v724_v37 = vmul.f32 %v1497_v11, %v595_v20  ;;  %975 = vst [vmem:[%s1528_s7 + $0x320] sm:$0xff] %v847_v28  ;;  %976 = vst [vmem:[%s1528_s7 + $0x328] sm:$0xff] %v848_v29  ;;  %v850_v41 = vadd.f32 %v722_v30, %v464_v24  ;;  %v467_v42 = vmul.f32 %v1491_v6, %v338_v25  ;;  %v608_v24 = vld [vmem:[%s1486_s6 + $0x3b0] sm:$0xff]  ;;  %v351_v25 = vld [vmem:[%s1469_s30 + $0x3b8] sm:$0xff] }
  0xa6   : > { %v725_v43 = vmul.f32 %v1497_v11, %v596_v26  ;;  %v468_v44 = vmul.f32 %v1491_v6, %v339_v27  ;;  %977 = vst [vmem:[%s1528_s7 + $0x330] sm:$0xff] %v849_v34  ;;  %v851_v48 = vadd.f32 %v723_v35, %v465_v31  ;;  %v726_v50 = vmul.f32 %v1497_v11, %v597_v32  ;;  %v609_v30 = vld [vmem:[%s1486_s6 + $0x3b8] sm:$0xff]  ;;  %v352_v31 = vld [vmem:[%s1469_s30 + $0x3c0] sm:$0xff] }
  0xa7   : > { %v852_v49 = vadd.f32 %v724_v37, %v466_v36  ;;  %v469_v51 = vmul.f32 %v1491_v6, %v340_v33  ;;  %978 = vst [vmem:[%s1528_s7 + $0x338] sm:$0xff] %v850_v41  ;;  %v727_v55 = vmul.f32 %v1497_v11, %v598_v38  ;;  %v470_v56 = vmul.f32 %v1491_v6, %v341_v39  ;;  %v610_v36 = vld [vmem:[%s1486_s6 + $0x3c0] sm:$0xff]  ;;  %v353_v37 = vld [vmem:[%s1469_s30 + $0x3c8] sm:$0xff] }
  0xa8   : > { %v853_v54 = vadd.f32 %v725_v43, %v467_v42  ;;  %v728_v57 = vmul.f32 %v1497_v11, %v599_v40  ;;  %979 = vst [vmem:[%s1528_s7 + $0x340] sm:$0xff] %v851_v48  ;;  %v854_v61 = vadd.f32 %v726_v50, %v468_v44  ;;  %v471_v62 = vmul.f32 %v1491_v6, %v342_v45  ;;  %v611_v38 = vld [vmem:[%s1486_s6 + $0x3c8] sm:$0xff]  ;;  %v354_v43 = vld [vmem:[%s1469_s30 + $0x3d0] sm:$0xff]  ;;  %v355_v45 = vld [vmem:[%s1469_s30 + $0x3d8] sm:$0xff] }
  0xa9   : > { %980 = vst [vmem:[%s1528_s7 + $0x348] sm:$0xff] %v852_v49  ;;  %v729_v63 = vmul.f32 %v1497_v11, %v600_v46  ;;  %v472_v0 = vmul.f32 %v1491_v6, %v343_v47  ;;  %v855_v4 = vadd.f32 %v727_v55, %v469_v51  ;;  %v730_v7 = vmul.f32 %v1497_v11, %v601_v52  ;;  %v612_v44 = vld [vmem:[%s1486_s6 + $0x3d0] sm:$0xff]  ;;  %v613_v50 = vld [vmem:[%s1486_s6 + $0x3d8] sm:$0xff]  ;;  %v356_v51 = vld [vmem:[%s1469_s30 + $0x3e0] sm:$0xff] }
  0xaa   : > { %981 = vst [vmem:[%s1528_s7 + $0x350] sm:$0xff] %v853_v54  ;;  %v856_v5 = vadd.f32 %v728_v57, %v470_v56  ;;  %v473_v8 = vmul.f32 %v1491_v6, %v344_v53  ;;  %982 = vst [vmem:[%s1528_s7 + $0x358] sm:$0xff] %v854_v61  ;;  %v731_v13 = vmul.f32 %v1497_v11, %v602_v58  ;;  %v614_v56 = vld [vmem:[%s1486_s6 + $0x3e0] sm:$0xff]  ;;  %v357_v57 = vld [vmem:[%s1469_s30 + $0x3e8] sm:$0xff] }
  0xab   : > { %v857_v12 = vadd.f32 %v729_v63, %v471_v62  ;;  %v474_v14 = vmul.f32 %v1491_v6, %v345_v59  ;;  %v732_v15 = vmul.f32 %v1497_v11, %v603_v60  ;;  %983 = vst [vmem:[%s1528_s7 + $0x360] sm:$0xff] %v855_v4  ;;  %v858_v19 = vadd.f32 %v730_v7, %v472_v0  ;;  %v615_v58 = vld [vmem:[%s1486_s6 + $0x3e8] sm:$0xff]  ;;  %v358_v63 = vld [vmem:[%s1469_s30 + $0x3f0] sm:$0xff]  ;;  %v617_v7 = vld [vmem:[%s1486_s6 + $0x3f8] sm:$0xff] }
  0xac   : > { %984 = vst [vmem:[%s1528_s7 + $0x368] sm:$0xff] %v856_v5  ;;  %v475_v20 = vmul.f32 %v1491_v6, %v346_v1  ;;  %v733_v21 = vmul.f32 %v1497_v11, %v604_v2  ;;  %v476_v22 = vmul.f32 %v1491_v6, %v347_v3  ;;  %v859_v26 = vadd.f32 %v731_v13, %v473_v8  ;;  %v616_v0 = vld [vmem:[%s1486_s6 + $0x3f0] sm:$0xff]  ;;  %v359_v1 = vld [vmem:[%s1469_s30 + $0x3f8] sm:$0xff]  ;;  %s1252_s30 = scalar_lea.vmem %s1251_s29, 32768 }
  0xad   : > { %985 = vst [vmem:[%s1528_s7 + $0x370] sm:$0xff] %v857_v12  ;;  %v860_v27 = vadd.f32 %v732_v15, %v474_v14  ;;  %v734_v28 = vmul.f32 %v1497_v11, %v605_v9  ;;  %v477_v29 = vmul.f32 %v1491_v6, %v348_v10  ;;  %986 = vst [vmem:[%s1528_s7 + $0x378] sm:$0xff] %v858_v19  ;;  %p1254_p10 = scmp.lt.s32.totalorder %s1252_s30, %s1246_s19 }
  0xae   : > { %v861_v32 = vadd.f32 %v733_v21, %v475_v20  ;;  %v735_v33 = vmul.f32 %v1497_v11, %v606_v16  ;;  %v478_v34 = vmul.f32 %v1491_v6, %v349_v17  ;;  %v736_v35 = vmul.f32 %v1497_v11, %v607_v18  ;;  %987 = vst [vmem:[%s1528_s7 + $0x380] sm:$0xff] %v859_v26 }
  0xaf   : > { %988 = vst [vmem:[%s1528_s7 + $0x388] sm:$0xff] %v860_v27  ;;  %v862_v39 = vadd.f32 %v734_v28, %v476_v22  ;;  %v479_v40 = vmul.f32 %v1491_v6, %v350_v23  ;;  %v737_v41 = vmul.f32 %v1497_v11, %v608_v24  ;;  %v480_v42 = vmul.f32 %v1491_v6, %v351_v25  ;;  %p1255_p1 = por %p1254_p10, %p1253_p9 }
  0xb0   : > { %989 = vst [vmem:[%s1528_s7 + $0x390] sm:$0xff] %v861_v32  ;;  %v863_v46 = vadd.f32 %v735_v33, %v477_v29  ;;  %v864_v47 = vadd.f32 %v736_v35, %v478_v34  ;;  %v738_v48 = vmul.f32 %v1497_v11, %v609_v30  ;;  %v481_v49 = vmul.f32 %v1491_v6, %v352_v31 }
  0xb1   : > { %990 = vst [vmem:[%s1528_s7 + $0x398] sm:$0xff] %v862_v39  ;;  %v865_v52 = vadd.f32 %v737_v41, %v479_v40  ;;  %v739_v53 = vmul.f32 %v1497_v11, %v610_v36  ;;  %v482_v54 = vmul.f32 %v1491_v6, %v353_v37  ;;  %v740_v55 = vmul.f32 %v1497_v11, %v611_v38  ;;  %p1256_p4 = pnand %p1255_p1, %p1249_p8 }
  0xb2   : > { %991 = vst [vmem:[%s1528_s7 + $0x3a0] sm:$0xff] %v863_v46  ;;  %992 = vst [vmem:[%s1528_s7 + $0x3a8] sm:$0xff] %v864_v47  ;;  %v866_v59 = vadd.f32 %v738_v48, %v480_v42  ;;  %v483_v60 = vmul.f32 %v1491_v6, %v354_v43  ;;  %v741_v61 = vmul.f32 %v1497_v11, %v612_v44 }
  0xb3   : > { %v484_v62 = vmul.f32 %v1491_v6, %v355_v45  ;;  %993 = vst [vmem:[%s1528_s7 + $0x3b0] sm:$0xff] %v865_v52  ;;  %v867_v2 = vadd.f32 %v739_v53, %v481_v49  ;;  %v868_v3 = vadd.f32 %v740_v55, %v482_v54  ;;  %v742_v4 = vmul.f32 %v1497_v11, %v613_v50 }
  0xb4   : > { %v485_v5 = vmul.f32 %v1491_v6, %v356_v51  ;;  %994 = vst [vmem:[%s1528_s7 + $0x3b8] sm:$0xff] %v866_v59  ;;  %v869_v8 = vadd.f32 %v741_v61, %v483_v60  ;;  %v743_v9 = vmul.f32 %v1497_v11, %v614_v56  ;;  %v486_v10 = vmul.f32 %v1491_v6, %v357_v57 }
  0xb5   : > { %v744_v12 = vmul.f32 %v1497_v11, %v615_v58  ;;  %995 = vst [vmem:[%s1528_s7 + $0x3c0] sm:$0xff] %v867_v2  ;;  %996 = vst [vmem:[%s1528_s7 + $0x3c8] sm:$0xff] %v868_v3  ;;  %v870_v13 = vadd.f32 %v742_v4, %v484_v62  ;;  %v487_v14 = vmul.f32 %v1491_v6, %v358_v63 }
  0xb6   : > { %v745_v15 = vmul.f32 %v1497_v11, %v616_v0  ;;  %v488_v16 = vmul.f32 %v1491_v6, %v359_v1  ;;  %997 = vst [vmem:[%s1528_s7 + $0x3d0] sm:$0xff] %v869_v8  ;;  %v871_v17 = vadd.f32 %v743_v9, %v485_v5  ;;  %v746_v19 = vmul.f32 %v1497_v11, %v617_v7 }
  0xb7   : > { %v872_v18 = vadd.f32 %v744_v12, %v486_v10  ;;  %998 = vst [vmem:[%s1528_s7 + $0x3d8] sm:$0xff] %v870_v13 }
  0xb8   : > { %v873_v20 = vadd.f32 %v745_v15, %v487_v14  ;;  %999 = vst [vmem:[%s1528_s7 + $0x3e0] sm:$0xff] %v871_v17  ;;  %v874_v6 = vadd.f32 %v746_v19, %v488_v16 }
  0xb9   : > { %1000 = vst [vmem:[%s1528_s7 + $0x3e8] sm:$0xff] %v872_v18 }
  0xba   : > { %1001 = vst [vmem:[%s1528_s7 + $0x3f0] sm:$0xff] %v873_v20  ;;  %1002 = vst [vmem:[%s1528_s7 + $0x3f8] sm:$0xff] %v874_v6 }
  0xbb   : > { %1259 = shalt.err (!%p1256_p4)
}
  0xbc   : > { %s1260_s26 = scalar_lea.hbm %s2134_s10, 16384  ;;  %s1264_s23 = scalar_lea.hbm %s2186_s3, 32768 }
  0xbd   : > { %p1261_p11 = scmp.ne.s32.totalorder %s2134_s10, %s1260_s26  ;;  %p1265_p13 = scmp.lt.s32.totalorder %s2134_s10, %s2186_s3 }
  0xbe   : > { %p1266_p3 = scmp.lt.s32.totalorder %s1264_s23, %s1260_s26 }
  0xbf   : > { %p1262_p5 = pnand %p1261_p11, %p2202_p2 }
  0xc0   : > { %p1267_p12 = por %p1266_p3, %p1265_p13 }
  0xc1   : > { %p1263_p6 = pneg %p1262_p5 }
  0xc3   : > { %p1268_p0 = pnand %p1267_p12, %p1263_p6 }
  0xc5   : > { %1271 = shalt.err (!%p1268_p0)
}
  0xc6   : > { %s1321_s6 = smov 512   ;;  %s1322_s7 = smov 32  }
  0xc7   : > { %1148 = dma.vmem_to_hbm [thread:$0]  (%p2202_p2), %s2136_s8, 16384, %s2134_s10, %s1004_s17, %s1321_s6, %s1321_s6, %s1322_s7  }
  0xc8 PF: > { %s1033_s4 = sand.u32 1, %s1302_s12   ;;  %p2203_p7 = scmp.ne.s32.totalorder %s2194_s25, 0 }
  0xc9   : > { %p2204_p8 = scmp.ge.s32.totalorder %s1314_s15, 2  ;;  %s1034_s16 = scalar_lea.sflag [#allocation4], %s1033_s4 }
  0xcb   : > { %p1159_p9 = pnand %p2204_p8, %p2203_p7 }
  0xcd   : > { %p1160_p10 = pneg %p1159_p9 }
  0xcf   : > { %1297 = dma.done.wait (%p1160_p10), %s1034_s16, 16384  }
  0xd0   : > { %1299 = vsyncadd (%p1160_p10), %s1034_s16, 4294950912  ;;  %p17_p1 = scmp.ge.s32.totalorder %s1368_s18, 4   ;;  %s2205_s12 = smov %s1306_s13 }
  0xd1   : > { %s2206_s13 = smov %s1310_s14  ;;  %s2207_s14 = smov %s1380_s21 }
  0xd2   : > { %s2208_s15 = smov %s1368_s18  ;;  %19 = sbr.rel (!%p17_p1) target bundleno = 6 (0x6), region = 85 }
  0xd7   :  { %1039 = vsyncpa [#allocation3], 1 }
  0xd8   :  { %1041 = vsyncpa [#allocation3 + $0x1], 1 }
  0xd9   :  { %1042 = vsyncpa [#allocation4], 1 }
  0xda   :  { %1044 = vsyncpa [#allocation4 + $0x1], 1 }
  0xdb   :  { %1045 = vsyncpa [#allocation5], 1 }
  0xdc   :  { %1047 = vsyncpa [#allocation5 + $0x1], 1 }

</bundles_post_ra>
